<compile_context>
chip_gen: v6e
topology: v6e:2x2x1
jax: 0.10.0
libtpu: 0.0.40
codegen_flags: <defaults>
</compile_context>

<pallas_src>
import math
import functools

import jax
import jax.numpy as jnp
from jax import lax
from jax.experimental import pallas as pl
from jax.experimental.pallas import tpu as pltpu


def _round_up(x, m):
    return ((x + m - 1) // m) * m


# ----------------------------- tiled linear (matmul + bias [+ mask]) kernels -----------------------------
def _linear_kernel(x_ref, w_ref, b_ref, o_ref, *, mxu_dtype):
    y = jnp.dot(x_ref[...].astype(mxu_dtype), w_ref[...].astype(mxu_dtype),
                preferred_element_type=jnp.float32) + b_ref[...]
    o_ref[...] = y.astype(o_ref.dtype)


def _linear_masked_kernel(x_ref, w_ref, b_ref, keep_ref, o_ref, *, mxu_dtype):
    y = jnp.dot(x_ref[...].astype(mxu_dtype), w_ref[...].astype(mxu_dtype),
                preferred_element_type=jnp.float32) + b_ref[...]
    o_ref[...] = (y * keep_ref[...]).astype(o_ref.dtype)


def pallas_linear(x2d, w, b, *, keep=None, tile_m=512, mxu_dtype=jnp.bfloat16,
                  out_dtype=jnp.float32):
    """x2d: (M, K), w: (K, Nout), b: (1, Nout) -> (M, Nout) in `out_dtype`.

    M-tiled so DMA/compute pipeline; HBM-bound at small K, so tile_m defaults to 512.
    Optional `keep` (M, 1) multiplier fuses the padding-mask zeroing into this pass.
    """
    M, K = x2d.shape
    Nout = w.shape[1]
    tile_m = min(tile_m, M)
    grid_m = pl.cdiv(M, tile_m)
    in_specs = [pl.BlockSpec((tile_m, K), lambda i: (i, 0)),
                pl.BlockSpec((K, Nout), lambda i: (0, 0)),
                pl.BlockSpec((1, Nout), lambda i: (0, 0))]
    args = [x2d, w, b]
    kern = _linear_kernel
    if keep is not None:
        in_specs.append(pl.BlockSpec((tile_m, 1), lambda i: (i, 0)))
        args.append(keep)
        kern = _linear_masked_kernel
    return pl.pallas_call(
        functools.partial(kern, mxu_dtype=mxu_dtype),
        out_shape=jax.ShapeDtypeStruct((M, Nout), out_dtype),
        grid=(grid_m,),
        in_specs=in_specs,
        out_specs=pl.BlockSpec((tile_m, Nout), lambda i: (i, 0)),
        compiler_params=pltpu.CompilerParams(dimension_semantics=("parallel",)),
    )(*args)


# ----------------------------- deformable-attention core kernel -----------------------------
def _msda_core_kernel(*refs, spatial_shapes, padded_shapes, n_heads, d_head,
                      n_levels, n_points):
    L, H, Dh, P = n_levels, n_heads, d_head, n_points
    LP = L * P
    val_refs = refs[:L]                          # (1, H, Hl_pad, Wl_pad*Dh) bf16, resident
    colmap_refs = refs[L:2 * L]                  # (1, Wl_pad*Dh) f32, lane -> column index
    fold_refs = refs[2 * L:3 * L]                # (Wl_pad*Dh, Dh) bf16, column-fold matrix
    locx_ref, locy_ref, attn_ref, out_ref = refs[3 * L:3 * L + 4]
    TQ = locx_ref.shape[1]

    # per-level row-index maps, hoisted OUT of the head loop (JAX does not CSE iota)
    rowmaps = [lax.broadcasted_iota(jnp.int32, (1, padded_shapes[l][0]), 1)
               .astype(jnp.float32) for l in range(L)]

    head_outs = []
    for h in range(H):                           # static unroll over heads
        # per-head softmax over L*P (matches F.softmax(attn, -1)); divide on the EUP
        logits_h = attn_ref[0, :, h * LP:(h + 1) * LP]            # (TQ, L*P)
        m = jnp.max(logits_h, axis=-1, keepdims=True)
        e = jnp.exp(logits_h - m)
        attn_h = e * pl.reciprocal(jnp.sum(e, axis=-1, keepdims=True), approx=True)

        lx_h = locx_ref[0, :, h * LP:(h + 1) * LP]                # (TQ, L*P)
        ly_h = locy_ref[0, :, h * LP:(h + 1) * LP]

        acc_h = jnp.zeros((TQ, Dh), jnp.float32)
        for l in range(L):                       # static unroll over levels
            Hl, Wl = spatial_shapes[l]
            v_hl = val_refs[l][0, h]             # (Hl_pad, Wl_pad*Dh) bf16, leading-axis index
            colmap = colmap_refs[l][...]         # (1, Wl_pad*Dh)
            fold = fold_refs[l][...]             # (Wl_pad*Dh, Dh)

            # grid_sample(align_corners=False): pixel coord = loc * size - 0.5
            lx = lx_h[:, l * P:(l + 1) * P] * float(Wl) - 0.5     # (TQ, P)
            ly = ly_h[:, l * P:(l + 1) * P] * float(Hl) - 0.5
            a = attn_h[:, l * P:(l + 1) * P]                      # (TQ, P)

            for p in range(P):                   # static unroll over points
                xp = lx[:, p:p + 1]              # (TQ, 1)
                yp = ly[:, p:p + 1]
                ap = a[:, p:p + 1]
                # tent weights == bilinear weights with zero padding; attn folded into rows
                R = ap * jnp.maximum(1.0 - jnp.abs(rowmaps[l] - yp), 0.0)   # (TQ, Hl_pad)
                G = jnp.dot(R.astype(jnp.bfloat16), v_hl,
                            preferred_element_type=jnp.float32)             # (TQ, Wl_pad*Dh)
                CE = jnp.maximum(1.0 - jnp.abs(colmap - xp), 0.0)           # (TQ, Wl_pad*Dh)
                acc_h = acc_h + jnp.dot((CE * G).astype(jnp.bfloat16), fold,
                                        preferred_element_type=jnp.float32)  # (TQ, Dh)
        head_outs.append(acc_h)

    # single lane-dense (TQ, d_model) store
    out_ref[0] = jnp.concatenate(head_outs, axis=-1).astype(out_ref.dtype)


# ----------------------------- parameter initialization (matches _reset_parameters) -----------------------------
def init_params(key, d_model, n_levels, n_heads, n_points):
    H, L, P = n_heads, n_levels, n_points

    thetas = jnp.arange(H, dtype=jnp.float32) * (2.0 * math.pi / H)
    grid_init = jnp.stack([jnp.cos(thetas), jnp.sin(thetas)], -1)            # (H, 2)
    grid_init = grid_init / jnp.max(jnp.abs(grid_init), axis=-1, keepdims=True)
    grid_init = jnp.broadcast_to(grid_init[:, None, None, :], (H, L, P, 2))
    grid_init = grid_init * jnp.arange(1, P + 1, dtype=jnp.float32)[None, None, :, None]
    so_bias = grid_init.reshape(1, H * L * P * 2)

    k1, k2 = jax.random.split(key)
    bound = math.sqrt(6.0 / (d_model + d_model))  # xavier_uniform for square matrices

    return {
        'sampling_offsets_w': jnp.zeros((d_model, H * L * P * 2), jnp.float32),
        'sampling_offsets_b': so_bias.astype(jnp.float32),
        'attention_weights_w': jnp.zeros((d_model, H * L * P), jnp.float32),
        'attention_weights_b': jnp.zeros((1, H * L * P), jnp.float32),
        'value_proj_w': jax.random.uniform(k1, (d_model, d_model), jnp.float32, -bound, bound),
        'value_proj_b': jnp.zeros((1, d_model), jnp.float32),
        'output_proj_w': jax.random.uniform(k2, (d_model, d_model), jnp.float32, -bound, bound),
        'output_proj_b': jnp.zeros((1, d_model), jnp.float32),
    }


# ----------------------------- forward (Pallas) -----------------------------
def ms_deform_attn_forward(params, query, reference_points, input_flatten,
                           input_spatial_shapes, input_level_start_index,
                           input_padding_mask=None, *,
                           d_model, n_levels, n_heads, n_points, tile_q=128):
    del input_level_start_index  # derived statically from input_spatial_shapes
    N, Lq, _ = query.shape
    _, Len_in, _ = input_flatten.shape
    H, L, P = n_heads, n_levels, n_points
    Dh = d_model // H
    HLP = H * L * P
    spatial_shapes = tuple((int(h), int(w)) for h, w in input_spatial_shapes)
    assert sum(h * w for h, w in spatial_shapes) == Len_in

    # ---- value projection: bf16 output, padding mask fused into the matmul pass ----
    keep = None
    if input_padding_mask is not None:
        keep = (1.0 - input_padding_mask.astype(jnp.float32)).reshape(N * Len_in, 1)
    value = pallas_linear(input_flatten.reshape(N * Len_in, d_model),
                          params['value_proj_w'], params['value_proj_b'],
                          keep=keep, out_dtype=jnp.bfloat16)
    value = value.reshape(N, Len_in, H, Dh)

    # ---- head-major, per-level (8,128)-padded value slabs (layout plumbing only) ----
    lane_mult = max(1, 128 // math.gcd(Dh, 128))   # Wl_pad*Dh multiple of 128
    padded_shapes = tuple((_round_up(h, 8), _round_up(w, lane_mult))
                          for h, w in spatial_shapes)
    val_levels, colmaps, folds = [], [], []
    start = 0
    for (Hl, Wl), (Hp, Wp) in zip(spatial_shapes, padded_shapes):
        Sl = Hl * Wl
        v_l = value[:, start:start + Sl].reshape(N, Hl, Wl, H, Dh)
        v_l = jnp.transpose(v_l, (0, 3, 1, 2, 4))                  # (N, H, Hl, Wl, Dh)
        v_l = jnp.pad(v_l, ((0, 0), (0, 0), (0, Hp - Hl), (0, Wp - Wl), (0, 0)))
        val_levels.append(v_l.reshape(N, H, Hp, Wp * Dh))
        # lane -> column-index map and column-fold matrix (tiny, resident kernel inputs)
        colmaps.append(jnp.repeat(jnp.arange(Wp, dtype=jnp.float32), Dh).reshape(1, Wp * Dh))
        folds.append(jnp.tile(jnp.eye(Dh, dtype=jnp.bfloat16), (Wp, 1)))   # (Wp*Dh, Dh)
        start += Sl

    # ---- fused sampling_offsets + attention_weights projection (f32 MXU: feeds coords) ----
    qw = jnp.concatenate([params['sampling_offsets_w'], params['attention_weights_w']], axis=1)
    qb = jnp.concatenate([params['sampling_offsets_b'], params['attention_weights_b']], axis=1)
    qp = pallas_linear(query.reshape(N * Lq, d_model), qw, qb,
                       mxu_dtype=jnp.float32, out_dtype=jnp.float32)
    qp = qp.reshape(N, Lq, HLP * 3)
    so = qp[..., :HLP * 2].reshape(N, Lq, H, L, P, 2)
    attn_logits = qp[..., HLP * 2:]                                          # (N, Lq, H*L*P)

    shapes_arr = jnp.asarray(spatial_shapes, jnp.float32)                    # (L, 2) = [H_l, W_l]
    if reference_points.shape[-1] == 2:
        offset_normalizer = jnp.stack([shapes_arr[:, 1], shapes_arr[:, 0]], -1)
        loc = (reference_points[:, :, None, :, None, :]
               + so / offset_normalizer[None, None, None, :, None, :])
    elif reference_points.shape[-1] == 4:
        loc = (reference_points[:, :, None, :, None, :2]
               + so / n_points * reference_points[:, :, None, :, None, 2:] * 0.5)
    else:
        raise ValueError('Last dim of reference_points must be 2 or 4')
    locx = loc[..., 0].reshape(N, Lq, HLP)
    locy = loc[..., 1].reshape(N, Lq, HLP)

    tile_q = min(tile_q, Lq)
    grid = (N, pl.cdiv(Lq, tile_q))

    # VMEM budget from actual block sizes (double-buffered) + intermediate headroom
    val_block_bytes = sum(H * hp * wp * Dh * 2 for hp, wp in padded_shapes)
    aux_block_bytes = sum(wp * Dh * 4 + wp * Dh * Dh * 2 for _, wp in padded_shapes)
    io_block_bytes = 3 * tile_q * HLP * 4 + tile_q * d_model * 2
    interm_bytes = 8 * tile_q * max(wp * Dh for _, wp in padded_shapes) * 4
    vmem_limit = int(min(64 << 20, max(32 << 20,
                         2 * (val_block_bytes + aux_block_bytes + io_block_bytes)
                         + interm_bytes + (4 << 20))))

    core = functools.partial(_msda_core_kernel,
                             spatial_shapes=spatial_shapes,
                             padded_shapes=padded_shapes,
                             n_heads=H, d_head=Dh, n_levels=L, n_points=P)
    # value / colmap / fold blocks ignore both grid axes where possible -> resident
    val_specs = [pl.BlockSpec((1, H, hp, wp * Dh), lambda n, q: (n, 0, 0, 0))
                 for hp, wp in padded_shapes]
    colmap_specs = [pl.BlockSpec((1, wp * Dh), lambda n, q: (0, 0))
                    for _, wp in padded_shapes]
    fold_specs = [pl.BlockSpec((wp * Dh, Dh), lambda n, q: (0, 0))
                  for _, wp in padded_shapes]
    out = pl.pallas_call(
        core,
        out_shape=jax.ShapeDtypeStruct((N, Lq, d_model), jnp.bfloat16),
        grid=grid,
        in_specs=val_specs + colmap_specs + fold_specs + [
            pl.BlockSpec((1, tile_q, HLP), lambda n, q: (n, q, 0)),
            pl.BlockSpec((1, tile_q, HLP), lambda n, q: (n, q, 0)),
            pl.BlockSpec((1, tile_q, HLP), lambda n, q: (n, q, 0)),
        ],
        out_specs=pl.BlockSpec((1, tile_q, d_model), lambda n, q: (n, q, 0)),
        compiler_params=pltpu.CompilerParams(
            dimension_semantics=("parallel", "parallel"),
            vmem_limit_bytes=vmem_limit),
    )(*val_levels, *colmaps, *folds, locx, locy, attn_logits)

    # output projection consumes the bf16 core output directly
    out = pallas_linear(out.reshape(N * Lq, d_model),
                        params['output_proj_w'], params['output_proj_b'],
                        out_dtype=jnp.float32)
    return out.reshape(N, Lq, d_model)


# ----------------------------- pure-JAX reference (gather-based, for verification) -----------------------------
def ms_deform_attn_ref(params, query, reference_points, input_flatten,
                       spatial_shapes, input_padding_mask=None, *,
                       d_model, n_levels, n_heads, n_points):
    N, Lq, _ = query.shape
    _, Len_in, _ = input_flatten.shape
    H, L, P = n_heads, n_levels, n_points
    Dh = d_model // H

    value = input_flatten @ params['value_proj_w'] + params['value_proj_b']
    if input_padding_mask is not None:
        value = jnp.where(input_padding_mask[..., None], 0.0, value)
    value = value.reshape(N, Len_in, H, Dh)

    so = (query @ params['sampling_offsets_w'] + params['sampling_offsets_b']).reshape(N, Lq, H, L, P, 2)
    aw = (query @ params['attention_weights_w'] + params['attention_weights_b']).reshape(N, Lq, H, L * P)
    aw = jax.nn.softmax(aw, axis=-1).reshape(N, Lq, H, L, P)

    shapes_arr = jnp.asarray(spatial_shapes, jnp.float32)
    norm = jnp.stack([shapes_arr[:, 1], shapes_arr[:, 0]], -1)
    loc = reference_points[:, :, None, :, None, :] + so / norm[None, None, None, :, None, :]

    acc = jnp.zeros((N, H, Lq, Dh), jnp.float32)
    start = 0
    for l, (Hl, Wl) in enumerate(spatial_shapes):
        Sl = Hl * Wl
        v_t = value[:, start:start + Sl].transpose(0, 2, 1, 3)        # (N, H, Sl, Dh)
        start += Sl
        x = loc[:, :, :, l, :, 0] * Wl - 0.5                          # (N, Lq, H, P)
        y = loc[:, :, :, l, :, 1] * Hl - 0.5
        x0 = jnp.floor(x); y0 = jnp.floor(y)
        fx = x - x0; fy = y - y0
        x0i = x0.astype(jnp.int32); y0i = y0.astype(jnp.int32)
        a_l = aw[:, :, :, l, :]                                       # (N, Lq, H, P)
        for dy in (0, 1):
            for dx in (0, 1):
                xi = x0i + dx
                yi = y0i + dy
                w = (fx if dx else 1.0 - fx) * (fy if dy else 1.0 - fy)
                valid = ((xi >= 0) & (xi < Wl) & (yi >= 0) & (yi < Hl)).astype(jnp.float32)
                sidx = jnp.clip(yi * Wl + xi, 0, Sl - 1)              # (N, Lq, H, P)
                sidx_t = sidx.transpose(0, 2, 1, 3)                   # (N, H, Lq, P)
                samp = jax.vmap(jax.vmap(lambda vs, idx: vs[idx]))(v_t, sidx_t)  # (N, H, Lq, P, Dh)
                wt = (w * valid * a_l).transpose(0, 2, 1, 3)          # (N, H, Lq, P)
                acc = acc + jnp.sum(wt[..., None] * samp, axis=3)

    out = acc.transpose(0, 2, 1, 3).reshape(N, Lq, d_model)
    out = out @ params['output_proj_w'] + params['output_proj_b']
    return out


# ----------------------------- main -----------------------------
if __name__ == "__main__":
    d_model, n_levels, n_heads, n_points = 32, 4, 4, 4
    spatial_shapes = ((8, 8), (4, 4), (4, 2), (2, 2))     # static per-level (H_l, W_l)
    N, Lq = 2, 8
    Len_in = sum(h * w for h, w in spatial_shapes)         # 92
    level_start_index = jnp.array([0, 64, 80, 88], jnp.int32)

    key = jax.random.PRNGKey(0)
    kp, kq, kf, kr, kw1, kw2 = jax.random.split(key, 6)
    params = init_params(kp, d_model, n_levels, n_heads, n_points)
    # Perturb the zero-initialized query-projection weights so the check exercises
    # non-uniform attention weights and per-query offsets (module semantics unchanged;
    # _reset_parameters zeros would make softmax trivially uniform).
    H, L, P = n_heads, n_levels, n_points
    params['sampling_offsets_w'] = 0.05 * jax.random.normal(kw1, (d_model, H * L * P * 2), jnp.float32)
    params['attention_weights_w'] = 0.5 * jax.random.normal(kw2, (d_model, H * L * P), jnp.float32)

    query = jax.random.normal(kq, (N, Lq, d_model), jnp.float32)
    input_flatten = jax.random.normal(kf, (N, Len_in, d_model), jnp.float32)
    reference_points = jax.random.uniform(kr, (N, Lq, n_levels, 2), jnp.float32)

    out = ms_deform_attn_forward(params, query, reference_points, input_flatten,
                                 spatial_shapes, level_start_index, None,
                                 d_model=d_model, n_levels=n_levels,
                                 n_heads=n_heads, n_points=n_points)
    out = jax.block_until_ready(out)

    ref = ms_deform_attn_ref(params, query, reference_points, input_flatten,
                             spatial_shapes, None,
                             d_model=d_model, n_levels=n_levels,
                             n_heads=n_heads, n_points=n_points)
    # Tolerance accounts for bf16 value/core-output storage, bf16 MXU operands (f32
    # accumulation) and the approx softmax reciprocal; genuine sampling bugs show up
    # as O(1) errors, well above this.
    err = float(jnp.max(jnp.abs(out - ref)))
    if not (err < 1e-1):
        raise RuntimeError(f"mismatch vs reference: max abs err = {err}")
    print("KERNEL_OK")
</pallas_src>

<mosaic_0001>
module attributes {stable_mosaic.version = 11 : i64} {
  func.func @_linear_kernel(%arg0: i32, %arg1: memref<184x32xf32, #tpu.memory_space<vmem>>, %arg2: memref<32x32xf32, #tpu.memory_space<vmem>>, %arg3: memref<1x32xf32, #tpu.memory_space<vmem>>, %arg4: memref<184x32xbf16, #tpu.memory_space<vmem>>) attributes {dimension_semantics = [#tpu.dimension_semantics<parallel>], iteration_bounds = array<i64: 1>, scalar_prefetch = 0 : i64, scratch_operands = 0 : i64, tpu.core_type = #tpu.core_type<tc>, window_params = [{transform_indices = @transform_0, window_bounds = array<i64: 184, 32>}, {pipeline_mode = #tpu.pipeline_mode<synchronous>, transform_indices = @transform_1, window_bounds = array<i64: 32, 32>}, {pipeline_mode = #tpu.pipeline_mode<synchronous>, transform_indices = @transform_2, window_bounds = array<i64: 1, 32>}, {transform_indices = @transform_3, window_bounds = array<i64: 184, 32>}]} {
    %c0 = arith.constant 0 : index
    %c0_0 = arith.constant 0 : index
    %0 = vector.load %arg1[%c0, %c0_0] : memref<184x32xf32, #tpu.memory_space<vmem>>, vector<184x32xf32>
    %1 = arith.truncf %0 : vector<184x32xf32> to vector<184x32xbf16>
    %c0_1 = arith.constant 0 : index
    %c0_2 = arith.constant 0 : index
    %2 = vector.load %arg2[%c0_1, %c0_2] : memref<32x32xf32, #tpu.memory_space<vmem>>, vector<32x32xf32>
    %3 = arith.truncf %2 : vector<32x32xf32> to vector<32x32xbf16>
    %cst = arith.constant dense<0.000000e+00> : vector<184x32xf32>
    %4 = tpu.matmul %1, %3, %cst {dimension_numbers = #tpu.dot_dimension_numbers<[1], [0], [0], [1], [0, 0, 1, 1], [], []>} : vector<184x32xbf16>, vector<32x32xbf16>, vector<184x32xf32> -> vector<184x32xf32>
    %c0_3 = arith.constant 0 : index
    %c0_4 = arith.constant 0 : index
    %5 = vector.load %arg3[%c0_3, %c0_4] : memref<1x32xf32, #tpu.memory_space<vmem>>, vector<1x32xf32>
    %6 = vector.broadcast %5 : vector<1x32xf32> to vector<184x32xf32>
    %7 = arith.addf %4, %6 : vector<184x32xf32>
    %8 = arith.truncf %7 : vector<184x32xf32> to vector<184x32xbf16>
    %c0_5 = arith.constant 0 : index
    %c0_6 = arith.constant 0 : index
    %9 = vector.load %arg4[%c0_5, %c0_6] : memref<184x32xbf16, #tpu.memory_space<vmem>>, vector<184x32xbf16>
    tpu.vector_store %arg4[%c0_5, %c0_6], %8 {strides = array<i32>} : memref<184x32xbf16, #tpu.memory_space<vmem>>, vector<184x32xbf16>,
    return
  }
  func.func @transform_0(%arg0: i32) -> (i32, i32) {
    %c0_i32 = arith.constant 0 : i32
    %c0_i32_0 = arith.constant 0 : i32
    return %arg0, %c0_i32 : i32, i32
  }
  func.func @transform_1(%arg0: i32) -> (i32, i32) {
    %c0_i32 = arith.constant 0 : i32
    %c0_i32_0 = arith.constant 0 : i32
    %c0_i32_1 = arith.constant 0 : i32
    return %c0_i32, %c0_i32_0 : i32, i32
  }
  func.func @transform_2(%arg0: i32) -> (i32, i32) {
    %c0_i32 = arith.constant 0 : i32
    %c0_i32_0 = arith.constant 0 : i32
    %c0_i32_1 = arith.constant 0 : i32
    return %c0_i32, %c0_i32_0 : i32, i32
  }
  func.func @transform_3(%arg0: i32) -> (i32, i32) {
    %c0_i32 = arith.constant 0 : i32
    %c0_i32_0 = arith.constant 0 : i32
    return %arg0, %c0_i32 : i32, i32
  }
}

</mosaic_0001>

<bundles_post_ra>
// kernel: tpu_custom_call.1
= control target key start
LH: loop header
LB: loop body
LE: loop exit
PB: predicated region body
PF: predicated region fallthrough
CT: control target
= control target key end

     0   :  { %vm63_vm0 = vcmask 261120   ;;  %vm321_vm1 = vcmask 257024   ;;  %s687_s1 = inlined_call_operand.vmem [shape: f32[32,32], index: 1, kind: input, shape index: {}]   ;;  %s688_s0 = inlined_call_operand.vmem [shape: f32[184,32], index: 0, kind: input, shape index: {}]   ;;  %s689_s2 = inlined_call_operand.vmem [shape: f32[1,32], index: 2, kind: input, shape index: {}]   ;;  %s690_s3 = inlined_call_operand.vmem [shape: bf16[184,32], index: 3, kind: output, shape index: {}]  }
   0x1   :  { %v52_v0 = vld [vmem:[%s687_s1 + $0x10] sm:$0xff]  ;;  %v53_v1 = vld [vmem:[%s687_s1 + $0x18] sm:$0xff]  ;;  %v50_v2 = vld [vmem:[%s687_s1] sm:$0xff] }
   0x2   :  { %v55_v3 = vpack.c.bf16 %v53_v1, %v52_v0  ;;  %v51_v4 = vld [vmem:[%s687_s1 + $0x8] sm:$0xff]  ;;  %v15_v5 = vld [vmem:[%s688_s0] sm:$0xff]  ;;  %v17_v12 = vld [vmem:[%s688_s0 + $0x10] sm:$0xff] }
   0x3   :  { %v16_v6 = vld [vmem:[%s688_s0 + $0x8] sm:$0xff]  ;;  %v54_v7 = vpack.c.bf16 %v51_v4, %v50_v2  ;;  %v27_v9 = vld [vmem:[%s688_s0 + $0x60] sm:$0xff]  ;;  %v18_v13 = vld [vmem:[%s688_s0 + $0x18] sm:$0xff] }
   0x4   :  { %v38_v8 = vpack.c.bf16 %v16_v6, %v15_v5  ;;  %v28_v10 = vld [vmem:[%s688_s0 + $0x68] sm:$0xff]  ;;  %422 = vmatprep.subr.bf16.mxu0 %v55_v3  ;;  %450 = vmatprep.subr.bf16.mxu1 %v55_v3  ;;  %v29_v14 = vld [vmem:[%s688_s0 + $0x70] sm:$0xff]  ;;  %v30_v15 = vld [vmem:[%s688_s0 + $0x78] sm:$0xff]  ;;  %v39_v20 = vpack.c.bf16 %v18_v13, %v17_v12 }
   0x5   :  { %v44_v11 = vpack.c.bf16 %v28_v10, %v27_v9  ;;  %423 = vmatpush3.bf16.msra.mxu0 %v55_v3  ;;  %452 = vmatpush3.bf16.msra.mxu1 %v55_v3  ;;  %v19_v16 = vld [vmem:[%s688_s0 + $0x20] sm:$0xff]  ;;  %v20_v17 = vld [vmem:[%s688_s0 + $0x28] sm:$0xff]  ;;  %v45_v21 = vpack.c.bf16 %v30_v15, %v29_v14  ;;  %v21_v24 = vld [vmem:[%s688_s0 + $0x30] sm:$0xff] }
   0x6   :  { %424 = vmatprep.subr.bf16.mxu0 %v54_v7  ;;  %451 = vmatprep.subr.bf16.mxu1 %v54_v7  ;;  %v31_v18 = vld [vmem:[%s688_s0 + $0x80] sm:$0xff]  ;;  %v32_v19 = vld [vmem:[%s688_s0 + $0x88] sm:$0xff]  ;;  %v40_v22 = vpack.c.bf16 %v20_v17, %v19_v16  ;;  %v22_v25 = vld [vmem:[%s688_s0 + $0x38] sm:$0xff] }
   0x7   :  { %426 = vmatprep.mubr.msk.bf16.mxu0 %vm63_vm0, %v38_v8  ;;  %438 = vmatprep.mubr.msk.bf16.mxu1 %vm63_vm0, %v44_v11  ;;  %v46_v23 = vpack.c.bf16 %v32_v19, %v31_v18  ;;  %v33_v26 = vld [vmem:[%s688_s0 + $0x90] sm:$0xff]  ;;  %v34_v27 = vld [vmem:[%s688_s0 + $0x98] sm:$0xff]  ;;  %v23_v28 = vld [vmem:[%s688_s0 + $0x40] sm:$0xff]  ;;  %v41_v32 = vpack.c.bf16 %v22_v25, %v21_v24 }
   0x8   :  { %v24_v29 = vld [vmem:[%s688_s0 + $0x48] sm:$0xff]  ;;  %v35_v30 = vld [vmem:[%s688_s0 + $0xa0] sm:$0xff]  ;;  %v47_v33 = vpack.c.bf16 %v34_v27, %v33_v26  ;;  %v25_v36 = vld [vmem:[%s688_s0 + $0x50] sm:$0xff] }
   0x9   :  { %425 = vmatpush3.bf16.msra.mxu0 %v54_v7  ;;  %453 = vmatpush3.bf16.msra.mxu1 %v54_v7  ;;  %v36_v31 = vld [vmem:[%s688_s0 + $0xa8] sm:$0xff]  ;;  %v42_v34 = vpack.c.bf16 %v24_v29, %v23_v28  ;;  %v26_v37 = vld [vmem:[%s688_s0 + $0x58] sm:$0xff]  ;;  %v37_v38 = vld [vmem:[%s688_s0 + $0xb0] sm:$0xff] }
   0xa   :  { %v48_v35 = vpack.c.bf16 %v36_v31, %v35_v30  ;;  %v43_v39 = vpack.c.bf16 %v26_v37, %v25_v36  ;;  %v49_v40 = vpack.c.bf16 %v37_v38, %v37_v38  ;;  %v570_v41 = vld [vmem:[%s689_s2] ss:$0 sm:$0xff] }
   0xc   :  { %427 = vmatmul.mubr.msk.bf16.vlgmr.msra.gmra.mxu0 %vm63_vm0, %v39_v20  ;;  %439 = vmatmul.mubr.msk.bf16.vlgmr.msra.gmra.mxu1 %vm63_vm0, %v45_v21 }
   0xd   :  { %430 = vmatprep.mubr.msk.bf16.mxu0 %vm63_vm0, %v40_v22  ;;  %442 = vmatprep.mubr.msk.bf16.mxu1 %vm63_vm0, %v46_v23 }
  0x14   :  { %431 = vmatmul.mubr.msk.bf16.gmra.mxu0 %vm63_vm0, %v41_v32  ;;  %443 = vmatmul.mubr.msk.bf16.gmra.mxu1 %vm63_vm0, %v47_v33 }
  0x15   :  { %434 = vmatprep.mubr.msk.bf16.mxu0 %vm63_vm0, %v42_v34  ;;  %446 = vmatprep.mubr.msk.bf16.mxu1 %vm63_vm0, %v48_v35 }
  0x1c   :  { %435 = vmatmul.mubr.msk.bf16.gmra.mxu0 %vm63_vm0, %v43_v39  ;;  %447 = vmatmul.mubr.msk.bf16.gmra.mxu1 %vm63_vm0, %v49_v40 }
  0xcc   :  { %v428_v42 = vpop.f32.mrf.mxu0  ;;  %v440_v43 = vpop.f32.mrf.mxu1 }
  0xcd   :  { %v143_v44 = vadd.f32 %v428_v42, %v570_v41  ;;  %v191_v45 = vadd.f32 %v440_v43, %v570_v41 }
  0xce   :  { %v134_v46 = vpop.f32.mrf.mxu0  ;;  %v182_v47 = vpop.f32.mrf.mxu1 }
  0xcf   :  { %v387_v48 = vpack.c.bf16 %v143_v44, %v143_v44  ;;  %v399_v49 = vpack.c.bf16 %v191_v45, %v191_v45  ;;  %v135_v50 = vadd.f32 %v570_v41, %v134_v46  ;;  %v183_v51 = vadd.f32 %v570_v41, %v182_v47 }
  0xd0   :  { %v429_v52 = vpop.f32.mrf.mxu0  ;;  %v441_v53 = vpop.f32.mrf.mxu1 }
  0xd1   :  { %324 = vst.msk [vmem:[%s690_s3 + $0x8] sm:$0xf] %vm321_vm1, %v387_v48  ;;  %336 = vst.msk [vmem:[%s690_s3 + $0x38] sm:$0xf] %vm321_vm1, %v399_v49  ;;  %v385_v54 = vpack.c.bf16 %v135_v50, %v135_v50  ;;  %v397_v55 = vpack.c.bf16 %v183_v51, %v183_v51  ;;  %v146_v56 = vadd.f32 %v429_v52, %v570_v41 }
  0xd2   :  { %v194_v57 = vadd.f32 %v441_v53, %v570_v41  ;;  %v137_v58 = vpop.f32.mrf.mxu0  ;;  %v185_v59 = vpop.f32.mrf.mxu1 }
  0xd3   :  { %322 = vst.msk [vmem:[%s690_s3] sm:$0xf] %vm321_vm1, %v385_v54  ;;  %334 = vst.msk [vmem:[%s690_s3 + $0x30] sm:$0xf] %vm321_vm1, %v397_v55  ;;  %v388_v60 = vpack.c.bf16 %v146_v56, %v146_v56  ;;  %v138_v62 = vadd.f32 %v570_v41, %v137_v58  ;;  %v186_v63 = vadd.f32 %v570_v41, %v185_v59 }
  0xd4   :  { %v400_v61 = vpack.c.bf16 %v194_v57, %v194_v57  ;;  %v432_v0 = vpop.f32.mrf.mxu0  ;;  %v444_v1 = vpop.f32.mrf.mxu1 }
  0xd5   :  { %325 = vst.msk [vmem:[%s690_s3 + $0xc] sm:$0xf] %vm321_vm1, %v388_v60  ;;  %v386_v2 = vpack.c.bf16 %v138_v62, %v138_v62  ;;  %v398_v3 = vpack.c.bf16 %v186_v63, %v186_v63  ;;  %v159_v4 = vadd.f32 %v432_v0, %v570_v41  ;;  %v207_v5 = vadd.f32 %v444_v1, %v570_v41 }
  0xd6   :  { %337 = vst.msk [vmem:[%s690_s3 + $0x3c] sm:$0xf] %vm321_vm1, %v400_v61  ;;  %v150_v6 = vpop.f32.mrf.mxu0  ;;  %v198_v7 = vpop.f32.mrf.mxu1 }
  0xd7   :  { %323 = vst.msk [vmem:[%s690_s3 + $0x4] sm:$0xf] %vm321_vm1, %v386_v2  ;;  %335 = vst.msk [vmem:[%s690_s3 + $0x34] sm:$0xf] %vm321_vm1, %v398_v3  ;;  %v391_v8 = vpack.c.bf16 %v159_v4, %v159_v4  ;;  %v403_v9 = vpack.c.bf16 %v207_v5, %v207_v5  ;;  %v151_v10 = vadd.f32 %v570_v41, %v150_v6 }
  0xd8   :  { %v199_v11 = vadd.f32 %v570_v41, %v198_v7  ;;  %v433_v12 = vpop.f32.mrf.mxu0  ;;  %v445_v13 = vpop.f32.mrf.mxu1 }
  0xd9   :  { %328 = vst.msk [vmem:[%s690_s3 + $0x18] sm:$0xf] %vm321_vm1, %v391_v8  ;;  %340 = vst.msk [vmem:[%s690_s3 + $0x48] sm:$0xf] %vm321_vm1, %v403_v9  ;;  %v389_v14 = vpack.c.bf16 %v151_v10, %v151_v10  ;;  %v162_v16 = vadd.f32 %v433_v12, %v570_v41  ;;  %v210_v17 = vadd.f32 %v445_v13, %v570_v41 }
  0xda   :  { %v401_v15 = vpack.c.bf16 %v199_v11, %v199_v11  ;;  %v153_v18 = vpop.f32.mrf.mxu0  ;;  %v201_v19 = vpop.f32.mrf.mxu1 }
  0xdb   :  { %326 = vst.msk [vmem:[%s690_s3 + $0x10] sm:$0xf] %vm321_vm1, %v389_v14  ;;  %v392_v20 = vpack.c.bf16 %v162_v16, %v162_v16  ;;  %v404_v21 = vpack.c.bf16 %v210_v17, %v210_v17  ;;  %v154_v22 = vadd.f32 %v570_v41, %v153_v18  ;;  %v202_v23 = vadd.f32 %v570_v41, %v201_v19 }
  0xdc   :  { %338 = vst.msk [vmem:[%s690_s3 + $0x40] sm:$0xf] %vm321_vm1, %v401_v15  ;;  %v436_v24 = vpop.f32.mrf.mxu0  ;;  %v448_v25 = vpop.f32.mrf.mxu1 }
  0xdd   :  { %329 = vst.msk [vmem:[%s690_s3 + $0x1c] sm:$0xf] %vm321_vm1, %v392_v20  ;;  %341 = vst.msk [vmem:[%s690_s3 + $0x4c] sm:$0xf] %vm321_vm1, %v404_v21  ;;  %v390_v26 = vpack.c.bf16 %v154_v22, %v154_v22  ;;  %v402_v27 = vpack.c.bf16 %v202_v23, %v202_v23  ;;  %v175_v28 = vadd.f32 %v436_v24, %v570_v41 }
  0xde   :  { %v223_v29 = vadd.f32 %v448_v25, %v570_v41  ;;  %v166_v30 = vpop.f32.mrf.mxu0  ;;  %v214_v31 = vpop.f32.mrf.mxu1 }
  0xdf   :  { %327 = vst.msk [vmem:[%s690_s3 + $0x14] sm:$0xf] %vm321_vm1, %v390_v26  ;;  %339 = vst.msk [vmem:[%s690_s3 + $0x44] sm:$0xf] %vm321_vm1, %v402_v27  ;;  %v395_v32 = vpack.c.bf16 %v175_v28, %v175_v28  ;;  %v167_v34 = vadd.f32 %v570_v41, %v166_v30  ;;  %v215_v35 = vadd.f32 %v570_v41, %v214_v31 }
  0xe0   :  { %v407_v33 = vpack.c.bf16 %v223_v29, %v223_v29  ;;  %v437_v36 = vpop.f32.mrf.mxu0  ;;  %v449_v37 = vpop.f32.mrf.mxu1 }
  0xe1   :  { %332 = vst.msk [vmem:[%s690_s3 + $0x28] sm:$0xf] %vm321_vm1, %v395_v32  ;;  %v393_v38 = vpack.c.bf16 %v167_v34, %v167_v34  ;;  %v405_v39 = vpack.c.bf16 %v215_v35, %v215_v35  ;;  %v178_v40 = vadd.f32 %v437_v36, %v570_v41 }
  0xe2   :  { %344 = vst.msk [vmem:[%s690_s3 + $0x58] sm:$0xf] %vm321_vm1, %v407_v33  ;;  %v169_v42 = vpop.f32.mrf.mxu0  ;;  %v217_v43 = vpop.f32.mrf.mxu1 }
  0xe3   :  { %330 = vst.msk [vmem:[%s690_s3 + $0x20] sm:$0xf] %vm321_vm1, %v393_v38  ;;  %342 = vst.msk [vmem:[%s690_s3 + $0x50] sm:$0xf] %vm321_vm1, %v405_v39  ;;  %v396_v44 = vpack.c.bf16 %v178_v40, %v178_v40  ;;  %v170_v45 = vadd.f32 %v570_v41, %v169_v42  ;;  %v218_v46 = vadd.f32 %v570_v41, %v217_v43 }
  0xe5   :  { %333 = vst.msk [vmem:[%s690_s3 + $0x2c] sm:$0xf] %vm321_vm1, %v396_v44  ;;  %v394_v47 = vpack.c.bf16 %v170_v45, %v170_v45  ;;  %v406_v48 = vpack.c.bf16 %v218_v46, %v218_v46 }
  0xe7   :  { %331 = vst.msk [vmem:[%s690_s3 + $0x24] sm:$0xf] %vm321_vm1, %v394_v47  ;;  %343 = vst.msk [vmem:[%s690_s3 + $0x54] sm:$0xf] %vm321_vm1, %v406_v48 }

</bundles_post_ra>
